<compile_context>
chip_gen: v5e
topology: v5e:2x2
jax: 0.10.0
libtpu: 0.0.40
codegen_flags: <defaults>
</compile_context>

<pallas_src>
import jax
import jax.numpy as jnp
from jax.experimental import pallas as pl
from jax.experimental.pallas import tpu as pltpu


def _round_up(x, m):
    return ((x + m - 1) // m) * m


def mlp_kernel(x_ref, w1_ref, b1_ref, w2_ref, b2_ref, o_ref, h_ref):
    """Grid = (batch tile i, output-column tile j); j is the inner axis.

    fc1 + bias + ReLU runs once per batch tile (j == 0) into a VMEM scratch
    held in the MXU compute dtype; every j step then only runs the fc2
    matmul against its column slice of W2 (f32 accumulation, f32 bias add).
    """
    @pl.when(pl.program_id(1) == 0)
    def _():
        h = jnp.dot(x_ref[...], w1_ref[...], preferred_element_type=jnp.float32)
        h_ref[...] = jnp.maximum(h + b1_ref[...], 0.0).astype(h_ref.dtype)

    out = jnp.dot(h_ref[...], w2_ref[...], preferred_element_type=jnp.float32)
    o_ref[...] = (out + b2_ref[...]).astype(o_ref.dtype)


def prepack_params(w1, b1, w2, b2, compute_dtype=jnp.bfloat16):
    """One-time padding/cast of the weights (do NOT call per forward pass).

    Zero padding is mathematically inert: padded K columns of x hit zero rows
    of W1, padded hidden units have zero weight & bias (ReLU(0)=0 feeds zero
    rows of W2), and padded output classes are sliced off in mlp_forward.
    """
    In, H = w1.shape
    C = w2.shape[1]
    in_p, h_p, c_p = (_round_up(d, 128) for d in (In, H, C))

    w1_p = jnp.zeros((in_p, h_p), compute_dtype).at[:In, :H].set(
        w1.astype(compute_dtype))
    b1_p = jnp.zeros((1, h_p), jnp.float32).at[:, :H].set(
        b1.reshape(1, -1).astype(jnp.float32))
    w2_p = jnp.zeros((h_p, c_p), compute_dtype).at[:H, :C].set(
        w2.astype(compute_dtype))
    b2_p = jnp.zeros((1, c_p), jnp.float32).at[:, :C].set(
        b2.reshape(1, -1).astype(jnp.float32))

    return dict(w1=w1_p, b1=b1_p, w2=w2_p, b2=b2_p,
                in_features=In, hidden=H, classes=C)


def _vmem_limit_bytes(needed):
    """Footprint + headroom, clamped to physical VMEM of this chip."""
    try:
        cap = int(pltpu.get_tpu_info().vmem_capacity_bytes)
    except Exception:
        cap = 64 << 20  # conservative: v7x per-TensorCore VMEM
    limit = needed + (16 << 20)          # headroom for Mosaic internal scratch
    limit = min(limit, cap - (8 << 20))  # never request the whole chip
    return max(limit, 32 << 20)


def mlp_forward(x, params, *, tile_m=None, tile_n=None, out_dtype=None):
    """x: [B, In] (any float dtype). params: output of prepack_params."""
    w1_p, b1_p, w2_p, b2_p = params["w1"], params["b1"], params["w2"], params["b2"]
    In, C = params["in_features"], params["classes"]
    in_p, h_p = w1_p.shape
    c_p = w2_p.shape[1]
    compute_dtype = w1_p.dtype
    out_dtype = out_dtype or x.dtype

    B = x.shape[0]
    if tile_m is None:
        # Small B: round_up(B, 8) avoids padding the batch 16x to 128.
        # Large B: 256 rows fill the 256-wide MXU on v6e/v7x and amortize the
        # ~0.35us per-grid-step overhead (v5e's 128-wide MXU is fine too).
        tile_m = min(_round_up(B, 8), 256)
    if tile_n is None:
        tile_n = c_p
        if c_p > 1024:  # tile wide output layers so W2 isn't fully resident
            for cand in (512, 256, 128):
                if c_p % cand == 0:
                    tile_n = cand
                    break
    b_p = _round_up(B, tile_m)

    # Per-call activation padding (cheap: x is small relative to the weights).
    x_p = jnp.zeros((b_p, in_p), compute_dtype).at[:B, :In].set(
        x.astype(compute_dtype))

    grid = (b_p // tile_m, c_p // tile_n)

    cbytes = jnp.dtype(compute_dtype).itemsize
    obytes = jnp.dtype(out_dtype).itemsize
    cost = pl.CostEstimate(
        flops=2 * b_p * (in_p * h_p + h_p * c_p),
        transcendentals=0,
        bytes_accessed=(x_p.size * cbytes + w1_p.size * cbytes + b1_p.size * 4
                        + w2_p.size * cbytes + b2_p.size * 4 + b_p * c_p * obytes),
    )

    def build(single_buffer_weights):
        def wspec(shape, imap):
            # Index-invariant weights: single-buffer to halve resident VMEM.
            if single_buffer_weights:
                return pl.BlockSpec(shape, imap, pipeline_mode=pl.Buffered(1))
            return pl.BlockSpec(shape, imap)

        weight_copies = 1 if single_buffer_weights else 2
        vmem_need = (
            weight_copies * (w1_p.size * cbytes + b1_p.size * 4)       # resident fc1
            + 2 * (h_p * tile_n * cbytes + tile_n * 4)                  # fc2 column tiles
            + 2 * (tile_m * in_p * cbytes + tile_m * tile_n * obytes)   # x / out tiles
            + tile_m * h_p * cbytes)                                    # activation scratch

        return pl.pallas_call(
            mlp_kernel,
            out_shape=jax.ShapeDtypeStruct((b_p, c_p), out_dtype),
            grid=grid,
            in_specs=[
                # x tile marches over batch; invariant in j (re-fetch skipped).
                pl.BlockSpec((tile_m, in_p), lambda i, j: (i, 0)),
                # fc1 weights/bias: index-invariant, DMA'd once, stay resident.
                wspec((in_p, h_p), lambda i, j: (0, 0)),
                wspec((1, h_p), lambda i, j: (0, 0)),
                # fc2 weights/bias: tiled over output columns (marching).
                pl.BlockSpec((h_p, tile_n), lambda i, j: (0, j)),
                pl.BlockSpec((1, tile_n), lambda i, j: (0, j)),
            ],
            out_specs=pl.BlockSpec((tile_m, tile_n), lambda i, j: (i, j)),
            scratch_shapes=[pltpu.VMEM((tile_m, h_p), compute_dtype)],
            compiler_params=pltpu.CompilerParams(
                # batch axis shards across TCs on v7x (needs >=2 batch tiles);
                # column axis carries the activation scratch -> arbitrary.
                dimension_semantics=("parallel", "arbitrary"),
                vmem_limit_bytes=_vmem_limit_bytes(vmem_need),
            ),
            cost_estimate=cost,
        )

    try:
        out_p = build(True)(x_p, w1_p, b1_p, w2_p, b2_p)
    except Exception:
        # pipeline_mode=pl.Buffered(1) unsupported on this jax version:
        # fall back to default double-buffered (semantics identical).
        out_p = build(False)(x_p, w1_p, b1_p, w2_p, b2_p)

    # TODO(synk): for hidden widths too large to keep W1 resident in VMEM
    # (v7x 64 MiB), add a third 'arbitrary' grid axis over h_p with an f32
    # accumulator scratch and pl.when init/finalize; optionally int8 (v5e/v6e)
    # or fp8 (v7x) weight storage for 2x VMEM headroom / MXU rate.
    return out_p[:B, :C]


def init_params(key, input_size, hidden_size, num_classes, dtype=jnp.float32):
    """Deterministic init mimicking PyTorch nn.Linear (uniform +/- 1/sqrt(fan_in))."""
    k1, k2, k3, k4 = jax.random.split(key, 4)
    bound1 = 1.0 / (input_size ** 0.5)
    bound2 = 1.0 / (hidden_size ** 0.5)
    # Stored as [in, out] (transposed relative to PyTorch's [out, in]).
    w1 = jax.random.uniform(k1, (input_size, hidden_size), dtype, -bound1, bound1)
    b1 = jax.random.uniform(k2, (1, hidden_size), dtype, -bound1, bound1)
    w2 = jax.random.uniform(k3, (hidden_size, num_classes), dtype, -bound2, bound2)
    b2 = jax.random.uniform(k4, (1, num_classes), dtype, -bound2, bound2)
    return w1, b1, w2, b2


if __name__ == "__main__":
    batch = 8
    input_size = 32
    hidden_size = 64
    num_classes = 10

    key = jax.random.PRNGKey(0)
    kx, kp = jax.random.split(key)
    x = jax.random.normal(kx, (batch, input_size), jnp.float32)
    w1, b1, w2, b2 = init_params(kp, input_size, hidden_size, num_classes)

    # One-time weight prepack (padding + bf16 cast) -- NOT per forward call.
    params = prepack_params(w1, b1, w2, b2)

    out = mlp_forward(x, params)
    out = jax.block_until_ready(out)

    # Pure-JAX f32 reference; tolerance loosened for bf16 MXU operands.
    ref = jnp.maximum(x @ w1 + b1, 0.0) @ w2 + b2
    assert out.shape == (batch, num_classes)
    assert jnp.allclose(out, ref, atol=3e-2, rtol=3e-2), "mismatch vs reference"

    print("KERNEL_OK")
</pallas_src>

<mosaic_0001>
module attributes {stable_mosaic.version = 11 : i64} {
  func.func @mlp_kernel(%arg0: i32, %arg1: i32, %arg2: memref<8x128xbf16, #tpu.memory_space<vmem>>, %arg3: memref<128x128xbf16, #tpu.memory_space<vmem>>, %arg4: memref<1x128xf32, #tpu.memory_space<vmem>>, %arg5: memref<128x128xbf16, #tpu.memory_space<vmem>>, %arg6: memref<1x128xf32, #tpu.memory_space<vmem>>, %arg7: memref<8x128xf32, #tpu.memory_space<vmem>>, %arg8: memref<8x128xbf16, #tpu.memory_space<vmem>>) attributes {dimension_semantics = [#tpu.dimension_semantics<parallel>, #tpu.dimension_semantics<arbitrary>], iteration_bounds = array<i64: 1, 1>, scalar_prefetch = 0 : i64, scratch_operands = 1 : i64, tpu.core_type = #tpu.core_type<tc>, window_params = [{transform_indices = @transform_0, window_bounds = array<i64: 8, 128>}, {pipeline_mode = #tpu.pipeline_mode<synchronous>, transform_indices = @transform_1, window_bounds = array<i64: 128, 128>}, {pipeline_mode = #tpu.pipeline_mode<synchronous>, transform_indices = @transform_2, window_bounds = array<i64: 1, 128>}, {transform_indices = @transform_3, window_bounds = array<i64: 128, 128>}, {transform_indices = @transform_4, window_bounds = array<i64: 1, 128>}, {transform_indices = @transform_5, window_bounds = array<i64: 8, 128>}]} {
    %c0_i32 = arith.constant 0 : i32
    %0 = arith.cmpi eq, %arg1, %c0_i32 : i32
    %1 = arith.extui %0 : i1 to i32
    %c0_i32_0 = arith.constant 0 : i32
    %2 = arith.cmpi ne, %1, %c0_i32_0 : i32
    scf.if %2 {
      %c0_8 = arith.constant 0 : index
      %c0_9 = arith.constant 0 : index
      %10 = vector.load %arg2[%c0_8, %c0_9] : memref<8x128xbf16, #tpu.memory_space<vmem>>, vector<8x128xbf16>
      %c0_10 = arith.constant 0 : index
      %c0_11 = arith.constant 0 : index
      %11 = vector.load %arg3[%c0_10, %c0_11] : memref<128x128xbf16, #tpu.memory_space<vmem>>, vector<128x128xbf16>
      %cst_12 = arith.constant dense<0.000000e+00> : vector<8x128xf32>
      %12 = tpu.matmul %10, %11, %cst_12 {dimension_numbers = #tpu.dot_dimension_numbers<[1], [0], [0], [1], [0, 0, 1, 1], [], []>} : vector<8x128xbf16>, vector<128x128xbf16>, vector<8x128xf32> -> vector<8x128xf32>
      %c0_13 = arith.constant 0 : index
      %c0_14 = arith.constant 0 : index
      %13 = vector.load %arg4[%c0_13, %c0_14] : memref<1x128xf32, #tpu.memory_space<vmem>>, vector<1x128xf32>
      %14 = vector.broadcast %13 : vector<1x128xf32> to vector<8x128xf32>
      %15 = arith.addf %12, %14 : vector<8x128xf32>
      %cst_15 = arith.constant 0.000000e+00 : f32
      %16 = vector.broadcast %cst_15 : f32 to vector<8x128xf32>
      %17 = arith.maximumf %15, %16 : vector<8x128xf32>
      %18 = arith.truncf %17 : vector<8x128xf32> to vector<8x128xbf16>
      %c0_16 = arith.constant 0 : index
      %c0_17 = arith.constant 0 : index
      %19 = vector.load %arg8[%c0_16, %c0_17] : memref<8x128xbf16, #tpu.memory_space<vmem>>, vector<8x128xbf16>
      tpu.vector_store %arg8[%c0_16, %c0_17], %18 {strides = array<i32>} : memref<8x128xbf16, #tpu.memory_space<vmem>>, vector<8x128xbf16>,
    } else {
    }
    %c0 = arith.constant 0 : index
    %c0_1 = arith.constant 0 : index
    %3 = vector.load %arg8[%c0, %c0_1] : memref<8x128xbf16, #tpu.memory_space<vmem>>, vector<8x128xbf16>
    %c0_2 = arith.constant 0 : index
    %c0_3 = arith.constant 0 : index
    %4 = vector.load %arg5[%c0_2, %c0_3] : memref<128x128xbf16, #tpu.memory_space<vmem>>, vector<128x128xbf16>
    %cst = arith.constant dense<0.000000e+00> : vector<8x128xf32>
    %5 = tpu.matmul %3, %4, %cst {dimension_numbers = #tpu.dot_dimension_numbers<[1], [0], [0], [1], [0, 0, 1, 1], [], []>} : vector<8x128xbf16>, vector<128x128xbf16>, vector<8x128xf32> -> vector<8x128xf32>
    %c0_4 = arith.constant 0 : index
    %c0_5 = arith.constant 0 : index
    %6 = vector.load %arg6[%c0_4, %c0_5] : memref<1x128xf32, #tpu.memory_space<vmem>>, vector<1x128xf32>
    %7 = vector.broadcast %6 : vector<1x128xf32> to vector<8x128xf32>
    %8 = arith.addf %5, %7 : vector<8x128xf32>
    %c0_6 = arith.constant 0 : index
    %c0_7 = arith.constant 0 : index
    %9 = vector.load %arg7[%c0_6, %c0_7] : memref<8x128xf32, #tpu.memory_space<vmem>>, vector<8x128xf32>
    tpu.vector_store %arg7[%c0_6, %c0_7], %8 {strides = array<i32>} : memref<8x128xf32, #tpu.memory_space<vmem>>, vector<8x128xf32>,
    return
  }
  func.func @transform_0(%arg0: i32, %arg1: i32) -> (i32, i32) {
    %c0_i32 = arith.constant 0 : i32
    %c0_i32_0 = arith.constant 0 : i32
    return %arg0, %c0_i32 : i32, i32
  }
  func.func @transform_1(%arg0: i32, %arg1: i32) -> (i32, i32) {
    %c0_i32 = arith.constant 0 : i32
    %c0_i32_0 = arith.constant 0 : i32
    %c0_i32_1 = arith.constant 0 : i32
    return %c0_i32, %c0_i32_0 : i32, i32
  }
  func.func @transform_2(%arg0: i32, %arg1: i32) -> (i32, i32) {
    %c0_i32 = arith.constant 0 : i32
    %c0_i32_0 = arith.constant 0 : i32
    %c0_i32_1 = arith.constant 0 : i32
    return %c0_i32, %c0_i32_0 : i32, i32
  }
  func.func @transform_3(%arg0: i32, %arg1: i32) -> (i32, i32) {
    %c0_i32 = arith.constant 0 : i32
    %c0_i32_0 = arith.constant 0 : i32
    return %c0_i32, %arg1 : i32, i32
  }
  func.func @transform_4(%arg0: i32, %arg1: i32) -> (i32, i32) {
    %c0_i32 = arith.constant 0 : i32
    %c0_i32_0 = arith.constant 0 : i32
    return %c0_i32, %arg1 : i32, i32
  }
  func.func @transform_5(%arg0: i32, %arg1: i32) -> (i32, i32) {
    %c0_i32 = arith.constant 0 : i32
    return %arg0, %arg1 : i32, i32
  }
}

module attributes {stable_mosaic.version = 11 : i64} {
  func.func @mlp_kernel(%arg0: i32, %arg1: i32, %arg2: memref<8x128xbf16, #tpu.memory_space<vmem>>, %arg3: memref<128x128xbf16, #tpu.memory_space<vmem>>, %arg4: memref<1x128xf32, #tpu.memory_space<vmem>>, %arg5: memref<128x128xbf16, #tpu.memory_space<vmem>>, %arg6: memref<1x128xf32, #tpu.memory_space<vmem>>, %arg7: memref<8x128xf32, #tpu.memory_space<vmem>>, %arg8: memref<8x128xbf16, #tpu.memory_space<vmem>>) attributes {dimension_semantics = [#tpu.dimension_semantics<parallel>, #tpu.dimension_semantics<arbitrary>], iteration_bounds = array<i64: 1, 1>, scalar_prefetch = 0 : i64, scratch_operands = 1 : i64, tpu.core_type = #tpu.core_type<tc>, window_params = [{transform_indices = @transform_0, window_bounds = array<i64: 8, 128>}, {pipeline_mode = #tpu.pipeline_mode<synchronous>, transform_indices = @transform_1, window_bounds = array<i64: 128, 128>}, {pipeline_mode = #tpu.pipeline_mode<synchronous>, transform_indices = @transform_2, window_bounds = array<i64: 1, 128>}, {transform_indices = @transform_3, window_bounds = array<i64: 128, 128>}, {transform_indices = @transform_4, window_bounds = array<i64: 1, 128>}, {transform_indices = @transform_5, window_bounds = array<i64: 8, 128>}]} {
    %c0_i32 = arith.constant 0 : i32
    %0 = arith.cmpi eq, %arg1, %c0_i32 : i32
    %1 = arith.extui %0 : i1 to i32
    %c0_i32_0 = arith.constant 0 : i32
    %2 = arith.cmpi ne, %1, %c0_i32_0 : i32
    scf.if %2 {
      %c0_8 = arith.constant 0 : index
      %c0_9 = arith.constant 0 : index
      %10 = vector.load %arg2[%c0_8, %c0_9] : memref<8x128xbf16, #tpu.memory_space<vmem>>, vector<8x128xbf16>
      %c0_10 = arith.constant 0 : index
      %c0_11 = arith.constant 0 : index
      %11 = vector.load %arg3[%c0_10, %c0_11] : memref<128x128xbf16, #tpu.memory_space<vmem>>, vector<128x128xbf16>
      %cst_12 = arith.constant dense<0.000000e+00> : vector<8x128xf32>
      %12 = tpu.matmul %10, %11, %cst_12 {dimension_numbers = #tpu.dot_dimension_numbers<[1], [0], [0], [1], [0, 0, 1, 1], [], []>} : vector<8x128xbf16>, vector<128x128xbf16>, vector<8x128xf32> -> vector<8x128xf32>
      %c0_13 = arith.constant 0 : index
      %c0_14 = arith.constant 0 : index
      %13 = vector.load %arg4[%c0_13, %c0_14] : memref<1x128xf32, #tpu.memory_space<vmem>>, vector<1x128xf32>
      %14 = vector.broadcast %13 : vector<1x128xf32> to vector<8x128xf32>
      %15 = arith.addf %12, %14 : vector<8x128xf32>
      %cst_15 = arith.constant 0.000000e+00 : f32
      %16 = vector.broadcast %cst_15 : f32 to vector<8x128xf32>
      %17 = arith.maximumf %15, %16 : vector<8x128xf32>
      %18 = arith.truncf %17 : vector<8x128xf32> to vector<8x128xbf16>
      %c0_16 = arith.constant 0 : index
      %c0_17 = arith.constant 0 : index
      %19 = vector.load %arg8[%c0_16, %c0_17] : memref<8x128xbf16, #tpu.memory_space<vmem>>, vector<8x128xbf16>
      tpu.vector_store %arg8[%c0_16, %c0_17], %18 {strides = array<i32>} : memref<8x128xbf16, #tpu.memory_space<vmem>>, vector<8x128xbf16>,
    } else {
    }
    %c0 = arith.constant 0 : index
    %c0_1 = arith.constant 0 : index
    %3 = vector.load %arg8[%c0, %c0_1] : memref<8x128xbf16, #tpu.memory_space<vmem>>, vector<8x128xbf16>
    %c0_2 = arith.constant 0 : index
    %c0_3 = arith.constant 0 : index
    %4 = vector.load %arg5[%c0_2, %c0_3] : memref<128x128xbf16, #tpu.memory_space<vmem>>, vector<128x128xbf16>
    %cst = arith.constant dense<0.000000e+00> : vector<8x128xf32>
    %5 = tpu.matmul %3, %4, %cst {dimension_numbers = #tpu.dot_dimension_numbers<[1], [0], [0], [1], [0, 0, 1, 1], [], []>} : vector<8x128xbf16>, vector<128x128xbf16>, vector<8x128xf32> -> vector<8x128xf32>
    %c0_4 = arith.constant 0 : index
    %c0_5 = arith.constant 0 : index
    %6 = vector.load %arg6[%c0_4, %c0_5] : memref<1x128xf32, #tpu.memory_space<vmem>>, vector<1x128xf32>
    %7 = vector.broadcast %6 : vector<1x128xf32> to vector<8x128xf32>
    %8 = arith.addf %5, %7 : vector<8x128xf32>
    %c0_6 = arith.constant 0 : index
    %c0_7 = arith.constant 0 : index
    %9 = vector.load %arg7[%c0_6, %c0_7] : memref<8x128xf32, #tpu.memory_space<vmem>>, vector<8x128xf32>
    tpu.vector_store %arg7[%c0_6, %c0_7], %8 {strides = array<i32>} : memref<8x128xf32, #tpu.memory_space<vmem>>, vector<8x128xf32>,
    return
  }
  func.func @transform_0(%arg0: i32, %arg1: i32) -> (i32, i32) {
    %c0_i32 = arith.constant 0 : i32
    %c0_i32_0 = arith.constant 0 : i32
    return %arg0, %c0_i32 : i32, i32
  }
  func.func @transform_1(%arg0: i32, %arg1: i32) -> (i32, i32) {
    %c0_i32 = arith.constant 0 : i32
    %c0_i32_0 = arith.constant 0 : i32
    %c0_i32_1 = arith.constant 0 : i32
    return %c0_i32, %c0_i32_0 : i32, i32
  }
  func.func @transform_2(%arg0: i32, %arg1: i32) -> (i32, i32) {
    %c0_i32 = arith.constant 0 : i32
    %c0_i32_0 = arith.constant 0 : i32
    %c0_i32_1 = arith.constant 0 : i32
    return %c0_i32, %c0_i32_0 : i32, i32
  }
  func.func @transform_3(%arg0: i32, %arg1: i32) -> (i32, i32) {
    %c0_i32 = arith.constant 0 : i32
    %c0_i32_0 = arith.constant 0 : i32
    return %c0_i32, %arg1 : i32, i32
  }
  func.func @transform_4(%arg0: i32, %arg1: i32) -> (i32, i32) {
    %c0_i32 = arith.constant 0 : i32
    %c0_i32_0 = arith.constant 0 : i32
    return %c0_i32, %arg1 : i32, i32
  }
  func.func @transform_5(%arg0: i32, %arg1: i32) -> (i32, i32) {
    %c0_i32 = arith.constant 0 : i32
    return %arg0, %arg1 : i32, i32
  }
}

</mosaic_0001>

<bundles_post_ra>
// kernel: tpu_custom_call.1
= control target key start
LH: loop header
LB: loop body
LE: loop exit
PB: predicated region body
PF: predicated region fallthrough
CT: control target
= control target key end

     0   :  { %10 = vsyncpa [#allocation4], 0  ;;  %s500_s0 = inlined_call_operand.hbm [shape: bf16[8,128], index: 0, kind: input, shape index: {}]   ;;  %s501_s1 = inlined_call_operand.hbm [shape: bf16[128,128], index: 1, kind: input, shape index: {}]   ;;  %s502_s2 = inlined_call_operand.vmem [shape: f32[1,128], index: 2, kind: input, shape index: {}]   ;;  %s503_s3 = inlined_call_operand.hbm [shape: bf16[128,128], index: 3, kind: input, shape index: {}]   ;;  %s504_s4 = inlined_call_operand.vmem [shape: f32[1,128], index: 4, kind: input, shape index: {}]   ;;  %s505_s5 = inlined_call_operand.hbm [shape: f32[8,128], index: 5, kind: output, shape index: {}]  }
   0x1   :  { %11 = vsyncpa [#allocation7], 0  ;;  %s28_s20 = sshll.u32 %s501_s1, 4  ;;  %s29_s20 = int_to_ptr.hbm [resolvable:$true] %s28_s20 }
   0x2   :  { %12 = vsyncpa [#allocation5], 0  ;;  %s446_s21 = smov [#allocation6]   ;;  %s18_s25 = sshll.u32 %s500_s0, 4  ;;  %s19_s25 = int_to_ptr.hbm [resolvable:$true] %s18_s25 }
   0x3   :  { %s30_s22 = sshll.u32 %s446_s21, 4  ;;  %s447_s26 = smov 64   ;;  %s31_s22 = int_to_ptr.vmem [resolvable:$true] %s30_s22 }
   0x4   :  { %s448_s27 = smov 4   ;;  %s449_s28 = smov [#allocation3]  }
   0x5   :  { %36 = dma.hbm_to_vmem [thread:$0]  %s29_s20, 1024, %s31_s22, [#allocation7], %s447_s26, %s447_s26, %s448_s27  }
   0x6   :  { %s20_s29 = sshll.u32 %s449_s28, 4  ;;  %s43_s7 = sshll.u32 %s503_s3, 4  ;;  %s21_s29 = int_to_ptr.vmem [resolvable:$true] %s20_s29  ;;  %s44_s7 = int_to_ptr.hbm [resolvable:$true] %s43_s7 }
   0x7   :  { %23 = dma.hbm_to_vmem [thread:$0]  %s19_s25, 64, %s21_s29, [#allocation4]  }
   0x8   :  { %s450_s1 = smov [#allocation8]  }
   0x9   :  { %s45_s8 = sshll.u32 %s450_s1, 4  ;;  %s46_s8 = int_to_ptr.vmem [resolvable:$true] %s45_s8 }
   0xa   :  { %51 = dma.hbm_to_vmem [thread:$0]  %s44_s7, 1024, %s46_s8, [#allocation7], %s447_s26, %s447_s26, %s448_s27  }
   0xb   :  { %440 = dma.done.wait [#allocation4], 64  }
   0xc   :  { %441 = vsyncadd [#allocation4], 4294967232 }
   0xd   :  { %442 = dma.done.wait [#allocation7], 2048  }
   0xe   :  { %443 = vsyncadd [#allocation7], 4294965248  ;;  %v327_v0 = vld [vmem:[#allocation6 + $0x38] sm:$0xff]  ;;  %v326_v1 = vld [vmem:[#allocation6 + $0x30] sm:$0xff]  ;;  %s451_s11 = smov [#allocation9]   ;;  %s245_s15 = sshll.u32 %s505_s5, 4  ;;  %s246_s15 = int_to_ptr.hbm [resolvable:$true] %s245_s15 }
   0xf   :  { %139 = vmatpush.bf16.msra.mxu0 %v327_v0  ;;  %v335_v2 = vld [vmem:[#allocation8 + $0x38] sm:$0xff]  ;;  %v334_v3 = vld [vmem:[#allocation8 + $0x30] sm:$0xff]  ;;  %v325_v4 = vld [vmem:[#allocation6 + $0x28] sm:$0xff]  ;;  %s243_s12 = sshll.u32 %s451_s11, 4  ;;  %s244_s12 = int_to_ptr.vmem [resolvable:$true] %s243_s12 }
  0x10   :  { %224 = vmatpush.bf16.msra.mxu1 %v335_v2  ;;  %v333_v5 = vld [vmem:[#allocation8 + $0x28] sm:$0xff]  ;;  %v324_v6 = vld [vmem:[#allocation6 + $0x20] sm:$0xff]  ;;  %v323_v8 = vld [vmem:[#allocation6 + $0x18] sm:$0xff] }
  0x11   :  { %v332_v7 = vld [vmem:[#allocation8 + $0x20] sm:$0xff]  ;;  %v322_v9 = vld [vmem:[#allocation6 + $0x10] sm:$0xff]  ;;  %v321_v10 = vld [vmem:[#allocation6 + $0x8] sm:$0xff] }
  0x12   :  { %v320_v11 = vld [vmem:[#allocation6] sm:$0xff]  ;;  %v70_v12 = vld [vmem:[#allocation3] sm:$0xf]  ;;  %v330_v14 = vld [vmem:[#allocation8 + $0x10] sm:$0xff] }
  0x13   :  { %140 = vmatpush.bf16.msra.mxu0 %v326_v1  ;;  %v331_v13 = vld [vmem:[#allocation8 + $0x18] sm:$0xff]  ;;  %v329_v15 = vld [vmem:[#allocation8 + $0x8] sm:$0xff]  ;;  %v328_v16 = vld [vmem:[#allocation8] sm:$0xff] }
  0x14   :  { %225 = vmatpush.bf16.msra.mxu1 %v334_v3  ;;  %v342_v17 = vld [vmem:[%s502_s2] ss:$0 sm:$0xff] }
  0x15   :  { %v343_v24 = vld [vmem:[%s504_s4] ss:$0 sm:$0xff] }
  0x17   :  { %141 = vmatpush.bf16.msra.mxu0 %v325_v4 }
  0x18   :  { %226 = vmatpush.bf16.msra.mxu1 %v333_v5 }
  0x1b   :  { %142 = vmatpush.bf16.msra.mxu0 %v324_v6 }
  0x1c   :  { %227 = vmatpush.bf16.msra.mxu1 %v332_v7 }
  0x1f   :  { %143 = vmatpush.bf16.msra.mxu0 %v323_v8 }
  0x20   :  { %228 = vmatpush.bf16.msra.mxu1 %v331_v13 }
  0x23   :  { %144 = vmatpush.bf16.msra.mxu0 %v322_v9 }
  0x24   :  { %229 = vmatpush.bf16.msra.mxu1 %v330_v14 }
  0x27   :  { %145 = vmatpush.bf16.msra.mxu0 %v321_v10 }
  0x28   :  { %230 = vmatpush.bf16.msra.mxu1 %v329_v15 }
  0x2b   :  { %146 = vmatpush.bf16.msra.mxu0 %v320_v11 }
  0x2c   :  { %231 = vmatpush.bf16.msra.mxu1 %v328_v16 }
  0x2e   :  { %147 = vmatmul.bf16.vlgmr.msra.gmra.mxu0 %v70_v12 }
  0xab   :  { %v148_v18 = vpop.f32.mrf.mxu0 }
  0xac   :  { %v149_v19 = vadd.f32 %v342_v17, %v148_v18 }
  0xae   :  { %v152_v20 = vmax.f32 %v149_v19, 0.0 }
  0xb0   :  { %v153_v21 = vpack.c.bf16 %v152_v20, %v152_v20 }
  0xb2   :  { %154 = vst [vmem:[#allocation2] sm:$0xf] %v153_v21 }
  0xb3   :  { %v150_v22 = vpop.f32.mrf.mxu0 }
  0xb9   :  { %v155_v23 = vld [vmem:[#allocation2] sm:$0xf] }
  0xba   :  { %232 = vmatmul.bf16.vlgmr.msra.gmra.mxu1 %v155_v23 }
 0x137   :  { %v233_v25 = vpop.f32.mrf.mxu1 }
 0x138   :  { %v234_v26 = vadd.f32 %v343_v24, %v233_v25 }
 0x13a   :  { %237 = vst [vmem:[#allocation9] sm:$0xff] %v234_v26 }
 0x13b   :  { %248 = dma.vmem_to_hbm [thread:$0]  %s244_s12, 128, %s246_s15, [#allocation5]  }
 0x13f   :  { %v235_v27 = vpop.f32.mrf.mxu1 }
 0x140   :  { %444 = dma.done.wait [#allocation5], 128  }
 0x141   :  { %445 = vsyncadd [#allocation5], 4294967168 }
 0x142   :  { %253 = vsyncpa [#allocation4], 1 }
 0x143   :  { %254 = vsyncpa [#allocation7], 1 }
 0x144   :  { %255 = vsyncpa [#allocation5], 1 }

// kernel: tpu_custom_call.1
= control target key start
LH: loop header
LB: loop body
LE: loop exit
PB: predicated region body
PF: predicated region fallthrough
CT: control target
= control target key end

     0   :  { %10 = vsyncpa [#allocation4], 0  ;;  %s500_s0 = inlined_call_operand.hbm [shape: bf16[8,128], index: 0, kind: input, shape index: {}]   ;;  %s501_s1 = inlined_call_operand.hbm [shape: bf16[128,128], index: 1, kind: input, shape index: {}]   ;;  %s502_s2 = inlined_call_operand.vmem [shape: f32[1,128], index: 2, kind: input, shape index: {}]   ;;  %s503_s3 = inlined_call_operand.hbm [shape: bf16[128,128], index: 3, kind: input, shape index: {}]   ;;  %s504_s4 = inlined_call_operand.vmem [shape: f32[1,128], index: 4, kind: input, shape index: {}]   ;;  %s505_s5 = inlined_call_operand.hbm [shape: f32[8,128], index: 5, kind: output, shape index: {}]  }
   0x1   :  { %11 = vsyncpa [#allocation7], 0  ;;  %s28_s20 = sshll.u32 %s501_s1, 4  ;;  %s29_s20 = int_to_ptr.hbm [resolvable:$true] %s28_s20 }
   0x2   :  { %12 = vsyncpa [#allocation5], 0  ;;  %s446_s21 = smov [#allocation6]   ;;  %s18_s25 = sshll.u32 %s500_s0, 4  ;;  %s19_s25 = int_to_ptr.hbm [resolvable:$true] %s18_s25 }
   0x3   :  { %s30_s22 = sshll.u32 %s446_s21, 4  ;;  %s447_s26 = smov 64   ;;  %s31_s22 = int_to_ptr.vmem [resolvable:$true] %s30_s22 }
   0x4   :  { %s448_s27 = smov 4   ;;  %s449_s28 = smov [#allocation3]  }
   0x5   :  { %36 = dma.hbm_to_vmem [thread:$0]  %s29_s20, 1024, %s31_s22, [#allocation7], %s447_s26, %s447_s26, %s448_s27  }
   0x6   :  { %s20_s29 = sshll.u32 %s449_s28, 4  ;;  %s43_s7 = sshll.u32 %s503_s3, 4  ;;  %s21_s29 = int_to_ptr.vmem [resolvable:$true] %s20_s29  ;;  %s44_s7 = int_to_ptr.hbm [resolvable:$true] %s43_s7 }
   0x7   :  { %23 = dma.hbm_to_vmem [thread:$0]  %s19_s25, 64, %s21_s29, [#allocation4]  }
   0x8   :  { %s450_s1 = smov [#allocation8]  }
   0x9   :  { %s45_s8 = sshll.u32 %s450_s1, 4  ;;  %s46_s8 = int_to_ptr.vmem [resolvable:$true] %s45_s8 }
   0xa   :  { %51 = dma.hbm_to_vmem [thread:$0]  %s44_s7, 1024, %s46_s8, [#allocation7], %s447_s26, %s447_s26, %s448_s27  }
   0xb   :  { %440 = dma.done.wait [#allocation4], 64  }
   0xc   :  { %441 = vsyncadd [#allocation4], 4294967232 }
   0xd   :  { %442 = dma.done.wait [#allocation7], 2048  }
   0xe   :  { %443 = vsyncadd [#allocation7], 4294965248  ;;  %v327_v0 = vld [vmem:[#allocation6 + $0x38] sm:$0xff]  ;;  %v326_v1 = vld [vmem:[#allocation6 + $0x30] sm:$0xff]  ;;  %s451_s11 = smov [#allocation9]   ;;  %s245_s15 = sshll.u32 %s505_s5, 4  ;;  %s246_s15 = int_to_ptr.hbm [resolvable:$true] %s245_s15 }
   0xf   :  { %139 = vmatpush.bf16.msra.mxu0 %v327_v0  ;;  %v335_v2 = vld [vmem:[#allocation8 + $0x38] sm:$0xff]  ;;  %v334_v3 = vld [vmem:[#allocation8 + $0x30] sm:$0xff]  ;;  %v325_v4 = vld [vmem:[#allocation6 + $0x28] sm:$0xff]  ;;  %s243_s12 = sshll.u32 %s451_s11, 4  ;;  %s244_s12 = int_to_ptr.vmem [resolvable:$true] %s243_s12 }
  0x10   :  { %224 = vmatpush.bf16.msra.mxu1 %v335_v2  ;;  %v333_v5 = vld [vmem:[#allocation8 + $0x28] sm:$0xff]  ;;  %v324_v6 = vld [vmem:[#allocation6 + $0x20] sm:$0xff]  ;;  %v323_v8 = vld [vmem:[#allocation6 + $0x18] sm:$0xff] }
  0x11   :  { %v332_v7 = vld [vmem:[#allocation8 + $0x20] sm:$0xff]  ;;  %v322_v9 = vld [vmem:[#allocation6 + $0x10] sm:$0xff]  ;;  %v321_v10 = vld [vmem:[#allocation6 + $0x8] sm:$0xff] }
  0x12   :  { %v320_v11 = vld [vmem:[#allocation6] sm:$0xff]  ;;  %v70_v12 = vld [vmem:[#allocation3] sm:$0xf]  ;;  %v330_v14 = vld [vmem:[#allocation8 + $0x10] sm:$0xff] }
  0x13   :  { %140 = vmatpush.bf16.msra.mxu0 %v326_v1  ;;  %v331_v13 = vld [vmem:[#allocation8 + $0x18] sm:$0xff]  ;;  %v329_v15 = vld [vmem:[#allocation8 + $0x8] sm:$0xff]  ;;  %v328_v16 = vld [vmem:[#allocation8] sm:$0xff] }
  0x14   :  { %225 = vmatpush.bf16.msra.mxu1 %v334_v3  ;;  %v342_v17 = vld [vmem:[%s502_s2] ss:$0 sm:$0xff] }
  0x15   :  { %v343_v24 = vld [vmem:[%s504_s4] ss:$0 sm:$0xff] }
  0x17   :  { %141 = vmatpush.bf16.msra.mxu0 %v325_v4 }
  0x18   :  { %226 = vmatpush.bf16.msra.mxu1 %v333_v5 }
  0x1b   :  { %142 = vmatpush.bf16.msra.mxu0 %v324_v6 }
  0x1c   :  { %227 = vmatpush.bf16.msra.mxu1 %v332_v7 }
  0x1f   :  { %143 = vmatpush.bf16.msra.mxu0 %v323_v8 }
  0x20   :  { %228 = vmatpush.bf16.msra.mxu1 %v331_v13 }
  0x23   :  { %144 = vmatpush.bf16.msra.mxu0 %v322_v9 }
  0x24   :  { %229 = vmatpush.bf16.msra.mxu1 %v330_v14 }
  0x27   :  { %145 = vmatpush.bf16.msra.mxu0 %v321_v10 }
  0x28   :  { %230 = vmatpush.bf16.msra.mxu1 %v329_v15 }
  0x2b   :  { %146 = vmatpush.bf16.msra.mxu0 %v320_v11 }
  0x2c   :  { %231 = vmatpush.bf16.msra.mxu1 %v328_v16 }
  0x2e   :  { %147 = vmatmul.bf16.vlgmr.msra.gmra.mxu0 %v70_v12 }
  0xab   :  { %v148_v18 = vpop.f32.mrf.mxu0 }
  0xac   :  { %v149_v19 = vadd.f32 %v342_v17, %v148_v18 }
  0xae   :  { %v152_v20 = vmax.f32 %v149_v19, 0.0 }
  0xb0   :  { %v153_v21 = vpack.c.bf16 %v152_v20, %v152_v20 }
  0xb2   :  { %154 = vst [vmem:[#allocation2] sm:$0xf] %v153_v21 }
  0xb3   :  { %v150_v22 = vpop.f32.mrf.mxu0 }
  0xb9   :  { %v155_v23 = vld [vmem:[#allocation2] sm:$0xf] }
  0xba   :  { %232 = vmatmul.bf16.vlgmr.msra.gmra.mxu1 %v155_v23 }
 0x137   :  { %v233_v25 = vpop.f32.mrf.mxu1 }
 0x138   :  { %v234_v26 = vadd.f32 %v343_v24, %v233_v25 }
 0x13a   :  { %237 = vst [vmem:[#allocation9] sm:$0xff] %v234_v26 }
 0x13b   :  { %248 = dma.vmem_to_hbm [thread:$0]  %s244_s12, 128, %s246_s15, [#allocation5]  }
 0x13f   :  { %v235_v27 = vpop.f32.mrf.mxu1 }
 0x140   :  { %444 = dma.done.wait [#allocation5], 128  }
 0x141   :  { %445 = vsyncadd [#allocation5], 4294967168 }
 0x142   :  { %253 = vsyncpa [#allocation4], 1 }
 0x143   :  { %254 = vsyncpa [#allocation7], 1 }
 0x144   :  { %255 = vsyncpa [#allocation5], 1 }

</bundles_post_ra>
